<compile_context>
chip_gen: v7x
topology: tpu7x:2x2x1
jax: 0.10.0
libtpu: 0.0.40
codegen_flags: <defaults>
</compile_context>

<pallas_src>
import functools

import jax
import jax.numpy as jnp
from jax.experimental import pallas as pl
from jax.experimental.pallas import tpu as pltpu

_LANE = 128
_VMEM_LIMIT_BYTES = 32 * 1024 * 1024   # safe on every generation (v7x has 64 MiB/TC)
_TARGET_TILE_BYTES = 2 * 1024 * 1024   # ~2 MiB per in/out buffer -> full pipelining
_MAX_BLOCK_M = 1024                    # roofline plateau is well below this
_MIN_GRID_STEPS = 8                    # amortize per-step overhead, feed both v7x TCs


def _prod(dims) -> int:
    p = 1
    for d in dims:
        p *= int(d)
    return p


def _round_up(x: int, mult: int) -> int:
    return ((x + mult - 1) // mult) * mult


def _round_down(x: int, mult: int) -> int:
    return (x // mult) * mult


# ---------------------------------------------------------------------------
# Path 1: full reduction axis resident in VMEM (the common case).
# ---------------------------------------------------------------------------
def _softmax_resident_kernel(x_ref, o_ref, *, is_log: bool):
    # x_ref / o_ref: (block_m, N) tiles; every row is an independent softmax.
    x = x_ref[...].astype(jnp.float32)
    m = jnp.max(x, axis=-1, keepdims=True)
    shifted = x - m
    e = jnp.exp(shifted)
    s = jnp.sum(e, axis=-1, keepdims=True)
    if is_log:
        out = shifted - jnp.log(s)
    else:
        # approx reciprocal lowers to the EUP slot; essentially free for the
        # softmax denominator.
        out = e * pl.reciprocal(s, approx=True)
    o_ref[...] = out.astype(o_ref.dtype)


def _softmax_resident(x2d, shape, is_log, m, n, itemsize, sublane):
    if m <= sublane:
        block_m = m  # block dim == full array dim -> exempt from (8,128) rule
    else:
        # ~2 MiB input tile, at least _MIN_GRID_STEPS grid steps, hard cap 1024 rows.
        rows_target = max(sublane,
                          _round_down(_TARGET_TILE_BYTES // (n * itemsize), sublane))
        rows_steps = _round_up(pl.cdiv(m, _MIN_GRID_STEPS), sublane)
        block_m = max(sublane, min(rows_target, rows_steps, _MAX_BLOCK_M))

    grid = (pl.cdiv(m, block_m),)
    kernel = functools.partial(_softmax_resident_kernel, is_log=is_log)

    cost = pl.CostEstimate(
        flops=5 * m * n,
        transcendentals=m * n + m,          # exp per element + log/reciprocal per row
        bytes_accessed=2 * m * n * itemsize,
    )

    out2d = pl.pallas_call(
        kernel,
        out_shape=jax.ShapeDtypeStruct((m, n), x2d.dtype),
        grid=grid,
        in_specs=[pl.BlockSpec((block_m, n), lambda i: (i, 0))],
        out_specs=pl.BlockSpec((block_m, n), lambda i: (i, 0)),
        compiler_params=pltpu.CompilerParams(
            dimension_semantics=("parallel",),   # rows independent; v7x dual-TC split
            vmem_limit_bytes=_VMEM_LIMIT_BYTES,
        ),
        cost_estimate=cost,
    )(x2d)
    return jnp.reshape(out2d, shape)


# ---------------------------------------------------------------------------
# Path 2: huge N -> N-chunked two-pass online softmax.
#   pass A: running max / corrected exp-sum per row (reduction axis last, scratch)
#   pass B: elementwise normalize using the per-row stats
# ---------------------------------------------------------------------------
def _softmax_stats_kernel(x_ref, max_ref, sum_ref, m_sc, l_sc, *,
                          n_total: int, block_n: int):
    kn = pl.program_id(1)

    @pl.when(kn == 0)
    def _():
        m_sc[...] = jnp.full(m_sc.shape, -jnp.inf, dtype=jnp.float32)
        l_sc[...] = jnp.zeros(l_sc.shape, dtype=jnp.float32)

    x = x_ref[...].astype(jnp.float32)
    # Mask out-of-range lanes of a ragged final N chunk (they hold garbage that
    # would otherwise corrupt the reduction).
    col = kn * block_n + jax.lax.broadcasted_iota(jnp.int32, x.shape, 1)
    x = jnp.where(col < n_total, x, -jnp.inf)

    m_cur = jnp.max(x, axis=-1, keepdims=True)
    m_new = jnp.maximum(m_sc[...], m_cur)
    # exp(-inf - finite) = 0 handles both the init step and masked lanes.
    l_sc[...] = l_sc[...] * jnp.exp(m_sc[...] - m_new) + jnp.sum(
        jnp.exp(x - m_new), axis=-1, keepdims=True)
    m_sc[...] = m_new

    @pl.when(kn == pl.num_programs(1) - 1)
    def _():
        max_ref[...] = m_sc[...]
        sum_ref[...] = l_sc[...]


def _softmax_norm_kernel(x_ref, max_ref, sum_ref, o_ref, *, is_log: bool):
    x = x_ref[...].astype(jnp.float32)
    shifted = x - max_ref[...]
    if is_log:
        out = shifted - jnp.log(sum_ref[...])
    else:
        out = jnp.exp(shifted) * pl.reciprocal(sum_ref[...], approx=True)
    o_ref[...] = out.astype(o_ref.dtype)


def _softmax_chunked(x2d, shape, is_log, m, n, itemsize, sublane):
    # Smallest legal row tile: the bandwidth is in the N chunks.
    block_m = m if m <= sublane else sublane
    # Lane-aligned N chunk sized for ~2 MiB per input chunk, never exceeding n.
    block_n = _round_down(_TARGET_TILE_BYTES // max(1, block_m * itemsize), _LANE)
    block_n = min(max(_LANE, block_n), _round_down(n, _LANE))

    grid = (pl.cdiv(m, block_m), pl.cdiv(n, block_n))

    stats_kernel = functools.partial(_softmax_stats_kernel, n_total=n, block_n=block_n)
    row_max, row_sum = pl.pallas_call(
        stats_kernel,
        out_shape=(jax.ShapeDtypeStruct((m, 1), jnp.float32),
                   jax.ShapeDtypeStruct((m, 1), jnp.float32)),
        grid=grid,
        in_specs=[pl.BlockSpec((block_m, block_n), lambda i, k: (i, k))],
        out_specs=(pl.BlockSpec((block_m, 1), lambda i, k: (i, 0)),
                   pl.BlockSpec((block_m, 1), lambda i, k: (i, 0))),
        scratch_shapes=[pltpu.VMEM((block_m, 1), jnp.float32),
                        pltpu.VMEM((block_m, 1), jnp.float32)],
        compiler_params=pltpu.CompilerParams(
            dimension_semantics=("parallel", "arbitrary"),
            vmem_limit_bytes=_VMEM_LIMIT_BYTES,
        ),
    )(x2d)

    norm_kernel = functools.partial(_softmax_norm_kernel, is_log=is_log)
    out2d = pl.pallas_call(
        norm_kernel,
        out_shape=jax.ShapeDtypeStruct((m, n), x2d.dtype),
        grid=grid,
        in_specs=[pl.BlockSpec((block_m, block_n), lambda i, k: (i, k)),
                  pl.BlockSpec((block_m, 1), lambda i, k: (i, 0)),
                  pl.BlockSpec((block_m, 1), lambda i, k: (i, 0))],
        out_specs=pl.BlockSpec((block_m, block_n), lambda i, k: (i, k)),
        compiler_params=pltpu.CompilerParams(
            dimension_semantics=("parallel", "arbitrary"),
            vmem_limit_bytes=_VMEM_LIMIT_BYTES,
        ),
    )(x2d, row_max, row_sum)
    return jnp.reshape(out2d, shape)


# ---------------------------------------------------------------------------
# Public wrapper — exact equivalent of OnnxSoftmaxV1V11.forward.
# ---------------------------------------------------------------------------
def onnx_softmax_v1_v11(x: jax.Array, axis: int = 1, is_log: bool = False,
                        *, _force_chunked: bool = False) -> jax.Array:
    shape = x.shape
    rank = len(shape)
    axis = axis % rank if rank > 0 else 0
    m = _prod(shape[:axis])
    n = _prod(shape[axis:])

    if m == 0 or n == 0 or n < _LANE:
        # Degenerate shapes or tiny reduction width: a (block_m, n<128) tile wastes
        # most of every vreg lane and lowers to masked partial stores, so XLA's
        # softmax is already competitive here.
        # TODO(synk): lane-packed Pallas path (rows packed into the 128-lane axis).
        x2d = jnp.reshape(x, (m, n))
        out2d = jax.nn.log_softmax(x2d, axis=-1) if is_log else jax.nn.softmax(x2d, axis=-1)
        return jnp.reshape(out2d, shape)

    x2d = jnp.reshape(x, (m, n))
    itemsize = jnp.dtype(x.dtype).itemsize
    # Sub-32-bit dtypes pack along sublanes: 8 rows f32 / 16 bf16 / 32 int8.
    sublane = max(8, 32 // itemsize)

    # Per-row footprint of the N-resident kernel: double-buffered in+out tiles plus
    # ~3 f32-wide compute temporaries (f32 upcast regardless of input dtype).
    bytes_per_row = n * (4 * itemsize + 3 * 4)
    min_rows = m if m <= sublane else sublane
    resident_fits = min_rows * bytes_per_row <= _VMEM_LIMIT_BYTES // 2

    if resident_fits and not _force_chunked:
        return _softmax_resident(x2d, shape, is_log, m, n, itemsize, sublane)
    return _softmax_chunked(x2d, shape, is_log, m, n, itemsize, sublane)


if __name__ == "__main__":
    key = jax.random.PRNGKey(0)
    k1, k2, k3 = jax.random.split(key, 3)

    # NCHW-like input, consistent with the ONNX default axis=1.
    x = jax.random.normal(k1, (2, 4, 16, 16), dtype=jnp.float32)

    # 1) softmax, axis=1 (flatten -> (2, 1024)): N-resident Pallas path.
    y = jax.block_until_ready(onnx_softmax_v1_v11(x, axis=1, is_log=False))
    ref = jax.nn.softmax(x.reshape(2, -1), axis=-1).reshape(x.shape)
    assert jnp.allclose(y, ref, atol=1e-3, rtol=1e-3), "softmax(axis=1) mismatch"

    # 2) log-softmax, axis=1.
    y_log = jax.block_until_ready(onnx_softmax_v1_v11(x, axis=1, is_log=True))
    ref_log = jax.nn.log_softmax(x.reshape(2, -1), axis=-1).reshape(x.shape)
    assert jnp.allclose(y_log, ref_log, atol=1e-3, rtol=1e-3), "log_softmax mismatch"

    # 3) softmax, axis=2 (flatten -> (8, 256)).
    y2 = jax.block_until_ready(onnx_softmax_v1_v11(x, axis=2, is_log=False))
    ref2 = jax.nn.softmax(x.reshape(8, -1), axis=-1).reshape(x.shape)
    assert jnp.allclose(y2, ref2, atol=1e-3, rtol=1e-3), "softmax(axis=2) mismatch"

    # 4) larger M to exercise a multi-step row grid (m=256, n=256 -> block_m=32, grid=(8,)).
    x3 = jax.random.normal(k2, (256, 4, 8, 8), dtype=jnp.float32)
    y3 = jax.block_until_ready(onnx_softmax_v1_v11(x3, axis=1, is_log=False))
    ref3 = jax.nn.softmax(x3.reshape(256, -1), axis=-1).reshape(x3.shape)
    assert jnp.allclose(y3, ref3, atol=1e-3, rtol=1e-3), "softmax(large M) mismatch"

    # 5) bf16 input through the same resident path (f32 accumulation in-kernel).
    xb = x.astype(jnp.bfloat16)
    yb = jax.block_until_ready(onnx_softmax_v1_v11(xb, axis=1, is_log=False))
    refb = jax.nn.softmax(xb.astype(jnp.float32).reshape(2, -1), axis=-1).reshape(x.shape)
    assert jnp.allclose(yb.astype(jnp.float32), refb, atol=2e-2, rtol=2e-2), "bf16 softmax mismatch"

    # 6) N-chunked online-softmax path, forced at a small shape with a ragged final
    #    N chunk (n=300 -> chunks of 256 + 44) to validate the in-kernel masking.
    x4 = jax.random.normal(k3, (2, 3, 10, 10), dtype=jnp.float32)
    y4 = jax.block_until_ready(onnx_softmax_v1_v11(x4, axis=1, is_log=False, _force_chunked=True))
    ref4 = jax.nn.softmax(x4.reshape(2, -1), axis=-1).reshape(x4.shape)
    assert jnp.allclose(y4, ref4, atol=1e-3, rtol=1e-3), "chunked softmax mismatch"

    y4l = jax.block_until_ready(onnx_softmax_v1_v11(x4, axis=1, is_log=True, _force_chunked=True))
    ref4l = jax.nn.log_softmax(x4.reshape(2, -1), axis=-1).reshape(x4.shape)
    assert jnp.allclose(y4l, ref4l, atol=1e-3, rtol=1e-3), "chunked log_softmax mismatch"

    print("KERNEL_OK")
</pallas_src>

<mosaic_0001>
module attributes {stable_mosaic.version = 11 : i64} {
  func.func @_softmax_resident_kernel(%arg0: i32, %arg1: memref<2x1024xf32, #tpu.memory_space<vmem>>, %arg2: memref<2x1024xf32, #tpu.memory_space<vmem>>) attributes {dimension_semantics = [#tpu.dimension_semantics<parallel>], iteration_bounds = array<i64: 1>, scalar_prefetch = 0 : i64, scratch_operands = 0 : i64, tpu.core_type = #tpu.core_type<tc>, window_params = [{transform_indices = @transform_0, window_bounds = array<i64: 2, 1024>}, {transform_indices = @transform_1, window_bounds = array<i64: 2, 1024>}]} {
    %c0 = arith.constant 0 : index
    %c0_0 = arith.constant 0 : index
    %0 = vector.load %arg1[%c0, %c0_0] : memref<2x1024xf32, #tpu.memory_space<vmem>>, vector<2x1024xf32>
    %cst = arith.constant dense<0xFF800000> : vector<2xf32>
    %1 = vector.multi_reduction <maximumf>, %0, %cst [1] : vector<2x1024xf32> to vector<2xf32>
    %2 = vector.shape_cast %1 : vector<2xf32> to vector<2x1xf32>
    %3 = vector.broadcast %2 : vector<2x1xf32> to vector<2x1024xf32>
    %4 = arith.subf %0, %3 : vector<2x1024xf32>
    %5 = math.exp %4 : vector<2x1024xf32>
    %cst_1 = arith.constant dense<0.000000e+00> : vector<2xf32>
    %6 = vector.multi_reduction <add>, %5, %cst_1 [1] : vector<2x1024xf32> to vector<2xf32>
    %7 = vector.shape_cast %6 : vector<2xf32> to vector<2x1xf32>
    %8 = tpu.reciprocal %7 {approx = true} : vector<2x1xf32> -> vector<2x1xf32>
    %9 = vector.broadcast %8 : vector<2x1xf32> to vector<2x1024xf32>
    %10 = arith.mulf %5, %9 : vector<2x1024xf32>
    %c0_2 = arith.constant 0 : index
    %c0_3 = arith.constant 0 : index
    %11 = vector.load %arg2[%c0_2, %c0_3] : memref<2x1024xf32, #tpu.memory_space<vmem>>, vector<2x1024xf32>
    tpu.vector_store %arg2[%c0_2, %c0_3], %10 {strides = array<i32>} : memref<2x1024xf32, #tpu.memory_space<vmem>>, vector<2x1024xf32>,
    return
  }
  func.func @transform_0(%arg0: i32) -> (i32, i32) {
    %c0_i32 = arith.constant 0 : i32
    %c0_i32_0 = arith.constant 0 : i32
    return %arg0, %c0_i32 : i32, i32
  }
  func.func @transform_1(%arg0: i32) -> (i32, i32) {
    %c0_i32 = arith.constant 0 : i32
    %c0_i32_0 = arith.constant 0 : i32
    return %arg0, %c0_i32 : i32, i32
  }
}

</mosaic_0001>

<bundles_post_ra>
// kernel: tpu_custom_call.1
= control target key start
LH: loop header
LB: loop body
LE: loop exit
PB: predicated region body
PF: predicated region fallthrough
CT: control target
= control target key end

     0   :  { %6 = vsyncpa [#allocation3], 0  ;;  %s304_s0 = inlined_call_operand.hbm [shape: f32[2,1024], index: 0, kind: input, shape index: {}]   ;;  %s305_s1 = inlined_call_operand.hbm [shape: f32[2,1024], index: 1, kind: output, shape index: {}]  }
   0x1   :  { %7 = vsyncpa [#allocation4], 0  ;;  %s250_s6 = smov [#allocation2]   ;;  %s202_s10 = scalar_lea.hbm %s304_s0, 256 }
   0x2   :  { %s14_s7 = sshll.u32 %s250_s6, 4  ;;  %p203_p0 = scmp.ne.s32.totalorder %s304_s0, %s202_s10  ;;  %s15_s7 = int_to_ptr.vmem [resolvable:$true] %s14_s7 }
   0x3   :  { %p206_p1 = scmp.lt.u32.totalorder %s202_s10, %s304_s0 }
   0x5   :  { %p208_p2 = pnand %p206_p1, %p203_p0 }
   0x7   :  { %211 = shalt.err (!%p208_p2)
}
   0x8   :  { %s212_s15 = scalar_lea.vmem %s15_s7, 256  ;;  %p217_p4 = scmp.lt.s32.totalorder %s15_s7, %s15_s7 }
   0x9   :  { %p213_p3 = scmp.ne.s32.totalorder %s15_s7, %s212_s15  ;;  %p218_p5 = scmp.lt.s32.totalorder %s212_s15, %s212_s15 }
   0xb   :  { %p219_p6 = por %p218_p5, %p217_p4 }
   0xd   :  { %p220_p7 = pnand %p219_p6, %p213_p3 }
   0xf   :  { %223 = shalt.err (!%p220_p7)
}
  0x10   :  { %17 = dma.hbm_to_vmem [thread:$0]  %s304_s0, 256, %s15_s7, [#allocation3]  }
  0x11   :  { %246 = dma.done.wait [#allocation3], 256  }
  0x12   :  { %247 = vsyncadd [#allocation3], 4294967040  ;;  %v29_v0 = vlaneseq  ;;  %v251_v1 = vmov 1983009808   ;;  %v21_v6 = vld [vmem:[#allocation2] sm:$0xff]  ;;  %v22_v7 = vld [vmem:[#allocation2 + $0x8] sm:$0xff] }
  0x13   :  { %v27_v2 = vunpack.c.l.s4 %v251_v1  ;;  %vm67_vm0 = vcmask 1041408   ;;  %v25_v8 = vcombine.high %v21_v6, %v21_v6  ;;  %v42_v10 = vcombine.high %v22_v7, %v22_v7  ;;  %s253_s0 = smov [#allocation5]  }
  0x14   :  { %v30_v3 = vshrl.u32 %v29_v0, 7  ;;  %v252_v33 = vmov 269488144   ;;  %s181_s18 = sshll.u32 %s253_s0, 4  ;;  %s182_s18 = int_to_ptr.vmem [resolvable:$true] %s181_s18 }
  0x15   :  { %v28_v4 = vunpack.c.0.s8 %v27_v2  ;;  %v87_v34 = vunpack.c.l.s4 %v252_v33  ;;  %s224_s19 = scalar_lea.vmem %s182_s18, 256  ;;  %p229_p9 = scmp.lt.s32.totalorder %s182_s18, %s182_s18 }
  0x16   :  { %p225_p8 = scmp.ne.s32.totalorder %s182_s18, %s224_s19  ;;  %p230_p10 = scmp.lt.s32.totalorder %s224_s19, %s224_s19 }
  0x17   :  { %v31_v5 = vsub.s32 %v28_v4, %v30_v3  ;;  %v88_v35 = vunpack.c.0.s8 %v87_v34 }
  0x18   :  { %p231_p11 = por %p230_p10, %p229_p9 }
  0x19   :  { %v32_v9 = vrot.slane %v21_v6, %v31_v5  ;;  %v49_v11 = vrot.slane %v22_v7, %v31_v5  ;;  %v39_v12 = vrot.slane %v25_v8, %v31_v5  ;;  %v56_v14 = vrot.slane %v42_v10, %v31_v5 }
  0x1a   :  { %v91_v36 = vsub.s32 %v88_v35, %v30_v3  ;;  %p232_p12 = pnand %p231_p11, %p225_p8 }
  0x1b   :  { %v40_v13 = vcombine.high %v32_v9, %v32_v9  ;;  %v57_v15 = vcombine.high %v49_v11, %v49_v11  ;;  %v68_v16 = vsel %vm67_vm0, %v32_v9, -inf  ;;  %v72_v17 = vsel %vm67_vm0, %v49_v11, -inf }
  0x1c   :  { %v41_v18 = vcombine.high %v39_v12, %v39_v12  ;;  %v58_v19 = vcombine.high %v56_v14, %v56_v14  ;;  %v70_v21 = vsel %vm67_vm0, %v39_v12, -inf  ;;  %v73_v22 = vmax.f32 %v68_v16, %v72_v17 }
  0x1d   :  { %v69_v20 = vsel %vm67_vm0, %v40_v13, -inf  ;;  %v74_v23 = vsel %vm67_vm0, %v57_v15, -inf  ;;  %v76_v24 = vsel %vm67_vm0, %v56_v14, -inf }
  0x1e   :  { %v71_v25 = vsel %vm67_vm0, %v41_v18, -inf  ;;  %v75_v26 = vmax.f32 %v69_v20, %v74_v23  ;;  %v77_v27 = vmax.f32 %v70_v21, %v76_v24  ;;  %v78_v28 = vsel %vm67_vm0, %v58_v19, -inf }
  0x1f   :  { %v79_v29 = vmax.f32 %v71_v25, %v78_v28 }
  0x20   :  { %v80_v30 = vmax.f32 %v73_v22, %v75_v26 }
  0x21   :  { %v81_v31 = vmax.f32 %v77_v27, %v79_v29 }
  0x23   :  { %v82_v32 = vmax.f32 %v80_v30, %v81_v31 }
  0x25   :  { %83 = vmax.xlane.f32.xlu0 %v82_v32 }
  0xb2   :  { %v84_v37 = vpop.xlane.xlu0 %83 }
  0xb3   :  { %v92_v38 = vrot.slane %v84_v37, %v91_v36 }
  0xb5   :  { %v94_v39 = vsub.f32 %v21_v6, %v92_v38  ;;  %v95_v40 = vsub.f32 %v22_v7, %v92_v38 }
  0xb7   :  { %v96_v41 = vmul.f32 1.442695, %v94_v39  ;;  %v98_v42 = vmul.f32 1.442695, %v95_v40 }
  0xb9   :  { %196 = vpow2.f32 %v96_v41 }
  0xba   :  { %198 = vpow2.f32 %v98_v42 }
  0xc3   :  { %v197_v43 = vpop.eup %196 }
  0xc4   :  { %v199_v44 = vpop.eup %198  ;;  %v102_v45 = vcombine.high %v197_v43, %v197_v43  ;;  %v109_v46 = vrot.slane %v197_v43, %v31_v5 }
  0xc5   :  { %v119_v49 = vcombine.high %v199_v44, %v199_v44  ;;  %v126_v51 = vrot.slane %v199_v44, %v31_v5 }
  0xc6   :  { %v116_v47 = vrot.slane %v102_v45, %v31_v5  ;;  %v117_v48 = vcombine.high %v109_v46, %v109_v46  ;;  %v144_v52 = vsel %vm67_vm0, %v109_v46, 0.0 }
  0xc7   :  { %v133_v57 = vrot.slane %v119_v49, %v31_v5  ;;  %v134_v58 = vcombine.high %v126_v51, %v126_v51  ;;  %v151_v61 = vsel %vm67_vm0, %v126_v51, 0.0 }
  0xc8   :  { %v118_v50 = vcombine.high %v116_v47, %v116_v47  ;;  %v145_v53 = vsel %vm67_vm0, %v117_v48, 0.0  ;;  %v147_v55 = vsel %vm67_vm0, %v116_v47, 0.0 }
  0xc9   :  { %v146_v54 = vadd.f32 %v145_v53, %v144_v52  ;;  %v135_v63 = vcombine.high %v133_v57, %v133_v57  ;;  %v153_v0 = vsel %vm67_vm0, %v134_v58, 0.0  ;;  %v155_v2 = vsel %vm67_vm0, %v133_v57, 0.0 }
  0xca   :  { %v149_v59 = vsel %vm67_vm0, %v118_v50, 0.0 }
  0xcb   :  { %v148_v56 = vadd.f32 %v147_v55, %v146_v54  ;;  %v157_v4 = vsel %vm67_vm0, %v135_v63, 0.0 }
  0xcd   :  { %v150_v60 = vadd.f32 %v149_v59, %v148_v56 }
  0xcf   :  { %v152_v62 = vadd.f32 %v151_v61, %v150_v60 }
  0xd1   :  { %v154_v1 = vadd.f32 %v153_v0, %v152_v62 }
  0xd3   :  { %v156_v3 = vadd.f32 %v155_v2, %v154_v1 }
  0xd5   :  { %v158_v6 = vadd.f32 %v157_v4, %v156_v3 }
  0xd7   :  { %159 = vadd.xlane.f32.xlu0 %v158_v6 }
 0x164   :  { %v160_v7 = vpop.xlane.xlu0 %159 }
 0x165   :  { %200 = vrcp.f32 %v160_v7 }
 0x16f   :  { %v201_v5 = vpop.eup %200 }
 0x170   :  { %v169_v8 = vrot.slane %v201_v5, %v91_v36 }
 0x172   :  { %v171_v9 = vmul.f32 %v197_v43, %v169_v8  ;;  %v172_v10 = vmul.f32 %v199_v44, %v169_v8 }
 0x174   :  { %173 = vst [vmem:[#allocation5] sm:$0xff] %v171_v9  ;;  %174 = vst [vmem:[#allocation5 + $0x8] sm:$0xff] %v172_v10 }
 0x175   :  { %235 = shalt.err (!%p232_p12)
}
 0x176   :  { %s236_s22 = scalar_lea.hbm %s305_s1, 256 }
 0x177   :  { %p237_p13 = scmp.ne.s32.totalorder %s305_s1, %s236_s22  ;;  %p240_p0 = scmp.lt.u32.totalorder %s236_s22, %s305_s1 }
 0x179   :  { %p242_p1 = pnand %p240_p0, %p237_p13 }
 0x17b   :  { %245 = shalt.err (!%p242_p1)
}
 0x17c   :  { %184 = dma.vmem_to_hbm [thread:$0]  %s182_s18, 256, %s305_s1, [#allocation4]  }
 0x17d   :  { %248 = dma.done.wait [#allocation4], 256  }
 0x17e   :  { %249 = vsyncadd [#allocation4], 4294967040 }
 0x17f   :  { %188 = vsyncpa [#allocation3], 1 }
 0x180   :  { %189 = vsyncpa [#allocation4], 1 }

</bundles_post_ra>
